<compile_context>
chip_gen: v7x
topology: tpu7x:2x2x1
jax: 0.10.0
libtpu: 0.0.40
codegen_flags: <defaults>
</compile_context>

<pallas_src>
import functools

import jax
import jax.numpy as jnp
from jax.experimental import pallas as pl
from jax.experimental.pallas import tpu as pltpu

EPS = 1e-5


# --------------------------------------------------------------------------------
# Kernel A:  y1 = W1 @ relu(x*scale1 + bias1)          (BN1 + ReLU + 1x1 conv)
#            also emits sum(y1) and sum(y1^2) over H*W for BN2 batch statistics.
# One image per grid step, everything in (C, H*W) layout (H*W lane-dense).
# --------------------------------------------------------------------------------
def _bn_relu_conv1x1_kernel(x_ref, scale_ref, bias_ref, w_ref,
                            y_ref, psum_ref, psq_ref):
    # x_ref: (Cin, HW)   scale/bias: (Cin, 1)   w_ref: (C4, Cin)
    h = jnp.maximum(x_ref[...] * scale_ref[...] + bias_ref[...], 0.0)    # (Cin, HW)
    y = jnp.dot(w_ref[...], h, preferred_element_type=jnp.float32)       # (C4, HW)
    y_ref[...] = y
    # Partial BN2 statistics (per image); avoids re-reading y1 from HBM.
    psum_ref[...] = jnp.sum(y, axis=1, keepdims=True)                    # (C4, 1)
    psq_ref[...] = jnp.sum(y * y, axis=1, keepdims=True)                 # (C4, 1)


def bn_relu_conv1x1(x_flat, scale1, bias1, w1m):
    """x_flat: (N, Cin, HW) -> (y1 (N, C4, HW), psum (N, C4, 1), psq (N, C4, 1))."""
    N, Cin, HW = x_flat.shape
    C4 = w1m.shape[0]
    return pl.pallas_call(
        _bn_relu_conv1x1_kernel,
        out_shape=(
            jax.ShapeDtypeStruct((N, C4, HW), jnp.float32),
            jax.ShapeDtypeStruct((N, C4, 1), jnp.float32),
            jax.ShapeDtypeStruct((N, C4, 1), jnp.float32),
        ),
        grid_spec=pltpu.PrefetchScalarGridSpec(
            num_scalar_prefetch=0,
            grid=(N,),
            in_specs=[
                pl.BlockSpec((None, Cin, HW), lambda n: (n, 0, 0)),
                pl.BlockSpec((Cin, 1), lambda n: (0, 0)),
                pl.BlockSpec((Cin, 1), lambda n: (0, 0)),
                pl.BlockSpec((C4, Cin), lambda n: (0, 0)),
            ],
            out_specs=[
                pl.BlockSpec((None, C4, HW), lambda n: (n, 0, 0)),
                pl.BlockSpec((None, C4, 1), lambda n: (n, 0, 0)),
                pl.BlockSpec((None, C4, 1), lambda n: (n, 0, 0)),
            ],
        ),
        compiler_params=pltpu.CompilerParams(dimension_semantics=("parallel",)),
    )(x_flat, scale1, bias1, w1m)


# --------------------------------------------------------------------------------
# Kernel B:  BN2 + ReLU + 3x3 conv (pad=1) + concat([y, x], channel axis).
# One image per grid step, (C, H*W) layout.  The conv is one deep matmul
# (G, 9*C4) @ (9*C4, HW) over an im2col buffer built with pltpu.roll + mask.
# Output slab is (G+Cin, HW): rows [0:G] = conv result, rows [G:] = x (concat).
# --------------------------------------------------------------------------------
def _bn_relu_conv3x3_concat_kernel(y1_ref, x_ref, scale_ref, bias_ref, w_ref,
                                   o_ref, patches_ref, *, H, W):
    C4 = y1_ref.shape[0]
    Cin = x_ref.shape[0]
    G = w_ref.shape[0]
    HW = H * W

    # BN2 affine + ReLU (this is the conv input; zero padding applies to it).
    h2 = jnp.maximum(y1_ref[...] * scale_ref[...] + bias_ref[...], 0.0)   # (C4, HW)

    # Flattened spatial coordinates, built once per grid step (cheap iota work).
    col = jax.lax.broadcasted_iota(jnp.int32, (1, HW), 1)
    hh = col // W
    ww = col - hh * W

    # im2col: 9 lane-rotations (XLU) + interior mask, written into an aligned
    # (9*C4, HW) scratch so the MXU sees a single K = 9*C4 contraction.
    for kh in range(3):
        for kw in range(3):
            dh, dw = kh - 1, kw - 1
            tap = kh * 3 + kw
            if dh == 0 and dw == 0:
                patches_ref[tap * C4:(tap + 1) * C4, :] = h2
            else:
                shift = (-(dh * W + dw)) % HW
                rolled = pltpu.roll(h2, shift, axis=1)
                valid = ((hh + dh >= 0) & (hh + dh < H)
                         & (ww + dw >= 0) & (ww + dw < W))
                patches_ref[tap * C4:(tap + 1) * C4, :] = jnp.where(valid, rolled, 0.0)

    y = jnp.dot(w_ref[...], patches_ref[...],
                preferred_element_type=jnp.float32)                       # (G, HW)

    # Fused concat([y, x], channel axis) -> lane-dense (G+Cin, HW) output slab.
    o_ref[0:G, :] = y
    o_ref[G:G + Cin, :] = x_ref[...]


def bn_relu_conv3x3_concat(y1, x_flat, scale2, bias2, w2_all, *, H, W):
    """Returns (N, G+Cin, HW) = concat([conv2(relu(bn2(y1))), x], channel)."""
    N, C4, HW = y1.shape
    Cin = x_flat.shape[1]
    G = w2_all.shape[0]
    Ctot = G + Cin
    kernel = functools.partial(_bn_relu_conv3x3_concat_kernel, H=H, W=W)
    return pl.pallas_call(
        kernel,
        out_shape=jax.ShapeDtypeStruct((N, Ctot, HW), jnp.float32),
        grid_spec=pltpu.PrefetchScalarGridSpec(
            num_scalar_prefetch=0,
            grid=(N,),
            in_specs=[
                pl.BlockSpec((None, C4, HW), lambda n: (n, 0, 0)),
                pl.BlockSpec((None, Cin, HW), lambda n: (n, 0, 0)),
                pl.BlockSpec((C4, 1), lambda n: (0, 0)),
                pl.BlockSpec((C4, 1), lambda n: (0, 0)),
                pl.BlockSpec((G, 9 * C4), lambda n: (0, 0)),
            ],
            out_specs=pl.BlockSpec((None, Ctot, HW), lambda n: (n, 0, 0)),
            scratch_shapes=[pltpu.VMEM((9 * C4, HW), jnp.float32)],
        ),
        compiler_params=pltpu.CompilerParams(dimension_semantics=("parallel",)),
    )(y1, x_flat, scale2, bias2, w2_all)


# --------------------------------------------------------------------------------
# Full Bottleneck forward (NCHW at the API boundary, no transposes anywhere).
# --------------------------------------------------------------------------------
def bottleneck_forward(x_nchw, params):
    g1, b1 = params["gamma1"], params["beta1"]
    g2, b2 = params["gamma2"], params["beta2"]
    w1, w2 = params["conv1_w"], params["conv2_w"]   # (C4,Cin,1,1), (G,C4,3,3)

    N, Cin, H, W = x_nchw.shape
    C4 = w1.shape[0]
    G = w2.shape[0]
    HW = H * W

    x = x_nchw.astype(jnp.float32).reshape(N, Cin, HW)   # free reshape, stays NCHW

    # --- BN1 (training-mode batch stats, biased variance) -> scale/bias -----------
    mean1 = jnp.mean(x, axis=(0, 2))
    var1 = jnp.mean((x - mean1[None, :, None]) ** 2, axis=(0, 2))
    s1 = g1 * jax.lax.rsqrt(var1 + EPS)
    scale1 = s1.reshape(Cin, 1)
    bias1 = (b1 - mean1 * s1).reshape(Cin, 1)

    w1m = w1[:, :, 0, 0]                                  # (C4, Cin)
    y1, psum, psq = bn_relu_conv1x1(x, scale1, bias1, w1m)

    # --- BN2 stats from the partial sums emitted by kernel A (one-pass formula) ---
    cnt = float(N * HW)
    tot = jnp.sum(psum[:, :, 0], axis=0)                  # (C4,)
    totsq = jnp.sum(psq[:, :, 0], axis=0)                 # (C4,)
    mean2 = tot / cnt
    var2 = jnp.maximum(totsq / cnt - mean2 * mean2, 0.0)  # biased batch variance
    s2 = g2 * jax.lax.rsqrt(var2 + EPS)
    scale2 = s2.reshape(C4, 1)
    bias2 = (b2 - mean2 * s2).reshape(C4, 1)

    # Conv2 weights re-laid-out for the im2col contraction: row (kh*3+kw)*C4 + c.
    w2_all = jnp.transpose(w2, (0, 2, 3, 1)).reshape(G, 9 * C4)

    out = bn_relu_conv3x3_concat(y1, x, scale2, bias2, w2_all, H=H, W=W)
    return out.reshape(N, G + Cin, H, W)                  # free reshape back to NCHW


# --------------------------------------------------------------------------------
# Pure-JAX reference (same math) for a correctness cross-check
# --------------------------------------------------------------------------------
def reference_forward(x_nchw, params):
    g1, b1 = params["gamma1"], params["beta1"]
    g2, b2 = params["gamma2"], params["beta2"]
    w1, w2 = params["conv1_w"], params["conv2_w"]
    x = x_nchw.astype(jnp.float32)

    def bn(v, g, b):
        m = jnp.mean(v, axis=(0, 2, 3), keepdims=True)
        var = jnp.mean((v - m) ** 2, axis=(0, 2, 3), keepdims=True)
        return (v - m) * jax.lax.rsqrt(var + EPS) * g[None, :, None, None] + b[None, :, None, None]

    dn = ("NCHW", "OIHW", "NCHW")
    h = jax.nn.relu(bn(x, g1, b1))
    y1 = jax.lax.conv_general_dilated(h, w1, (1, 1), "VALID", dimension_numbers=dn)
    h2 = jax.nn.relu(bn(y1, g2, b2))
    y = jax.lax.conv_general_dilated(h2, w2, (1, 1), ((1, 1), (1, 1)), dimension_numbers=dn)
    return jnp.concatenate([y, x], axis=1)


if __name__ == "__main__":
    in_planes, growth_rate = 8, 8
    C4 = 4 * growth_rate
    N, H, W = 2, 16, 16

    key = jax.random.PRNGKey(0)
    k = jax.random.split(key, 7)
    params = {
        "gamma1": 1.0 + 0.1 * jax.random.normal(k[0], (in_planes,), jnp.float32),
        "beta1": 0.1 * jax.random.normal(k[1], (in_planes,), jnp.float32),
        "gamma2": 1.0 + 0.1 * jax.random.normal(k[2], (C4,), jnp.float32),
        "beta2": 0.1 * jax.random.normal(k[3], (C4,), jnp.float32),
        "conv1_w": jax.random.normal(k[4], (C4, in_planes, 1, 1), jnp.float32)
                   * (2.0 / in_planes) ** 0.5,
        "conv2_w": jax.random.normal(k[5], (growth_rate, C4, 3, 3), jnp.float32)
                   * (2.0 / (C4 * 9)) ** 0.5,
    }
    x = jax.random.normal(k[6], (N, in_planes, H, W), jnp.float32)

    out = jax.block_until_ready(bottleneck_forward(x, params))
    assert out.shape == (N, growth_rate + in_planes, H, W), out.shape

    ref = jax.block_until_ready(reference_forward(x, params))
    # Tight tolerance: the only expected divergence is the one-pass
    # E[y^2]-E[y]^2 variance for BN2 and matmul accumulation order.
    assert jnp.allclose(out, ref, rtol=2e-5, atol=2e-5), float(jnp.max(jnp.abs(out - ref)))

    print("KERNEL_OK")
</pallas_src>

<mosaic_0001>
module attributes {stable_mosaic.version = 11 : i64} {
  func.func @_bn_relu_conv1x1_kernel(%arg0: i32, %arg1: memref<1x8x256xf32, #tpu.memory_space<vmem>>, %arg2: memref<8x1xf32, #tpu.memory_space<vmem>>, %arg3: memref<8x1xf32, #tpu.memory_space<vmem>>, %arg4: memref<32x8xf32, #tpu.memory_space<vmem>>, %arg5: memref<1x32x256xf32, #tpu.memory_space<vmem>>, %arg6: memref<1x32x1xf32, #tpu.memory_space<vmem>>, %arg7: memref<1x32x1xf32, #tpu.memory_space<vmem>>) attributes {dimension_semantics = [#tpu.dimension_semantics<parallel>], iteration_bounds = array<i64: 2>, scalar_prefetch = 0 : i64, scratch_operands = 0 : i64, tpu.core_type = #tpu.core_type<tc>, window_params = [{transform_indices = @transform_0, window_bounds = array<i64: 1, 8, 256>}, {pipeline_mode = #tpu.pipeline_mode<synchronous>, transform_indices = @transform_1, window_bounds = array<i64: 8, 1>}, {pipeline_mode = #tpu.pipeline_mode<synchronous>, transform_indices = @transform_2, window_bounds = array<i64: 8, 1>}, {pipeline_mode = #tpu.pipeline_mode<synchronous>, transform_indices = @transform_3, window_bounds = array<i64: 32, 8>}, {transform_indices = @transform_4, window_bounds = array<i64: 1, 32, 256>}, {transform_indices = @transform_5, window_bounds = array<i64: 1, 32, 1>}, {transform_indices = @transform_6, window_bounds = array<i64: 1, 32, 1>}]} {
    %c0 = arith.constant 0 : index
    %c0_0 = arith.constant 0 : index
    %c0_1 = arith.constant 0 : index
    %0 = vector.load %arg1[%c0, %c0_0, %c0_1] : memref<1x8x256xf32, #tpu.memory_space<vmem>>, vector<1x8x256xf32>
    %1 = vector.shape_cast %0 : vector<1x8x256xf32> to vector<8x256xf32>
    %c0_2 = arith.constant 0 : index
    %c0_3 = arith.constant 0 : index
    %2 = vector.load %arg2[%c0_2, %c0_3] : memref<8x1xf32, #tpu.memory_space<vmem>>, vector<8x1xf32>
    %3 = vector.broadcast %2 : vector<8x1xf32> to vector<8x256xf32>
    %4 = arith.mulf %1, %3 : vector<8x256xf32>
    %c0_4 = arith.constant 0 : index
    %c0_5 = arith.constant 0 : index
    %5 = vector.load %arg3[%c0_4, %c0_5] : memref<8x1xf32, #tpu.memory_space<vmem>>, vector<8x1xf32>
    %6 = vector.broadcast %5 : vector<8x1xf32> to vector<8x256xf32>
    %7 = arith.addf %4, %6 : vector<8x256xf32>
    %cst = arith.constant 0.000000e+00 : f32
    %8 = vector.broadcast %cst : f32 to vector<8x256xf32>
    %9 = arith.maximumf %7, %8 : vector<8x256xf32>
    %c0_6 = arith.constant 0 : index
    %c0_7 = arith.constant 0 : index
    %10 = vector.load %arg4[%c0_6, %c0_7] : memref<32x8xf32, #tpu.memory_space<vmem>>, vector<32x8xf32>
    %cst_8 = arith.constant dense<0.000000e+00> : vector<32x256xf32>
    %11 = tpu.matmul %10, %9, %cst_8 {dimension_numbers = #tpu.dot_dimension_numbers<[1], [0], [0], [1], [0, 0, 1, 1], [], []>} : vector<32x8xf32>, vector<8x256xf32>, vector<32x256xf32> -> vector<32x256xf32>
    %c0_9 = arith.constant 0 : index
    %c0_10 = arith.constant 0 : index
    %c0_11 = arith.constant 0 : index
    %12 = vector.load %arg5[%c0_9, %c0_10, %c0_11] : memref<1x32x256xf32, #tpu.memory_space<vmem>>, vector<1x32x256xf32>
    %13 = vector.shape_cast %12 : vector<1x32x256xf32> to vector<32x256xf32>
    %14 = vector.shape_cast %11 : vector<32x256xf32> to vector<1x32x256xf32>
    tpu.vector_store %arg5[%c0_9, %c0_10, %c0_11], %14 {strides = array<i32>} : memref<1x32x256xf32, #tpu.memory_space<vmem>>, vector<1x32x256xf32>,
    %cst_12 = arith.constant dense<0.000000e+00> : vector<32xf32>
    %15 = vector.multi_reduction <add>, %11, %cst_12 [1] : vector<32x256xf32> to vector<32xf32>
    %16 = vector.shape_cast %15 : vector<32xf32> to vector<32x1xf32>
    %c0_13 = arith.constant 0 : index
    %c0_14 = arith.constant 0 : index
    %c0_15 = arith.constant 0 : index
    %17 = vector.load %arg6[%c0_13, %c0_14, %c0_15] : memref<1x32x1xf32, #tpu.memory_space<vmem>>, vector<1x32x1xf32>
    %18 = vector.shape_cast %17 : vector<1x32x1xf32> to vector<32x1xf32>
    %19 = vector.shape_cast %16 : vector<32x1xf32> to vector<1x32x1xf32>
    tpu.vector_store %arg6[%c0_13, %c0_14, %c0_15], %19 {strides = array<i32>} : memref<1x32x1xf32, #tpu.memory_space<vmem>>, vector<1x32x1xf32>,
    %20 = arith.mulf %11, %11 : vector<32x256xf32>
    %cst_16 = arith.constant dense<0.000000e+00> : vector<32xf32>
    %21 = vector.multi_reduction <add>, %20, %cst_16 [1] : vector<32x256xf32> to vector<32xf32>
    %22 = vector.shape_cast %21 : vector<32xf32> to vector<32x1xf32>
    %c0_17 = arith.constant 0 : index
    %c0_18 = arith.constant 0 : index
    %c0_19 = arith.constant 0 : index
    %23 = vector.load %arg7[%c0_17, %c0_18, %c0_19] : memref<1x32x1xf32, #tpu.memory_space<vmem>>, vector<1x32x1xf32>
    %24 = vector.shape_cast %23 : vector<1x32x1xf32> to vector<32x1xf32>
    %25 = vector.shape_cast %22 : vector<32x1xf32> to vector<1x32x1xf32>
    tpu.vector_store %arg7[%c0_17, %c0_18, %c0_19], %25 {strides = array<i32>} : memref<1x32x1xf32, #tpu.memory_space<vmem>>, vector<1x32x1xf32>,
    return
  }
  func.func @transform_0(%arg0: i32) -> (i32, i32, i32) {
    %c0_i32 = arith.constant 0 : i32
    %c0_i32_0 = arith.constant 0 : i32
    %c0_i32_1 = arith.constant 0 : i32
    return %arg0, %c0_i32, %c0_i32_0 : i32, i32, i32
  }
  func.func @transform_1(%arg0: i32) -> (i32, i32) {
    %c0_i32 = arith.constant 0 : i32
    %c0_i32_0 = arith.constant 0 : i32
    %c0_i32_1 = arith.constant 0 : i32
    return %c0_i32, %c0_i32_0 : i32, i32
  }
  func.func @transform_2(%arg0: i32) -> (i32, i32) {
    %c0_i32 = arith.constant 0 : i32
    %c0_i32_0 = arith.constant 0 : i32
    %c0_i32_1 = arith.constant 0 : i32
    return %c0_i32, %c0_i32_0 : i32, i32
  }
  func.func @transform_3(%arg0: i32) -> (i32, i32) {
    %c0_i32 = arith.constant 0 : i32
    %c0_i32_0 = arith.constant 0 : i32
    %c0_i32_1 = arith.constant 0 : i32
    return %c0_i32, %c0_i32_0 : i32, i32
  }
  func.func @transform_4(%arg0: i32) -> (i32, i32, i32) {
    %c0_i32 = arith.constant 0 : i32
    %c0_i32_0 = arith.constant 0 : i32
    %c0_i32_1 = arith.constant 0 : i32
    return %arg0, %c0_i32, %c0_i32_0 : i32, i32, i32
  }
  func.func @transform_5(%arg0: i32) -> (i32, i32, i32) {
    %c0_i32 = arith.constant 0 : i32
    %c0_i32_0 = arith.constant 0 : i32
    %c0_i32_1 = arith.constant 0 : i32
    return %arg0, %c0_i32, %c0_i32_0 : i32, i32, i32
  }
  func.func @transform_6(%arg0: i32) -> (i32, i32, i32) {
    %c0_i32 = arith.constant 0 : i32
    %c0_i32_0 = arith.constant 0 : i32
    %c0_i32_1 = arith.constant 0 : i32
    return %arg0, %c0_i32, %c0_i32_0 : i32, i32, i32
  }
}

</mosaic_0001>

<bundles_post_ra>
// kernel: tpu_custom_call.1
= control target key start
LH: loop header
LB: loop body
LE: loop exit
PB: predicated region body
PF: predicated region fallthrough
CT: control target
= control target key end

     0   :  { %12 = vsyncpa [#allocation3], 0  ;;  %s920_s0 = inlined_call_operand.vmem [shape: f32[2,8,256], index: 0, kind: input, shape index: {}]   ;;  %s921_s1 = inlined_call_operand.vmem [shape: f32[8,1], index: 1, kind: input, shape index: {}]   ;;  %s922_s2 = inlined_call_operand.vmem [shape: f32[8,1], index: 2, kind: input, shape index: {}]   ;;  %s923_s3 = inlined_call_operand.vmem [shape: f32[32,8], index: 3, kind: input, shape index: {}]   ;;  %s924_s4 = inlined_call_operand.hbm [shape: f32[2,32,256], index: 4, kind: output, shape index: {0}]   ;;  %s925_s5 = inlined_call_operand.vmem [shape: f32[2,32,1], index: 5, kind: output, shape index: {1}]   ;;  %s926_s6 = inlined_call_operand.vmem [shape: f32[2,32,1], index: 6, kind: output, shape index: {2}]  }
   0x1   :  { %14 = vsyncpa [#allocation3 + $0x1], 0  ;;  %s766_s21 = smov 0   ;;  %s768_s22 = smov 0  }
   0x2   :  { %s770_s23 = smov 0   ;;  %s772_s24 = smov 0  }
   0x3 LB: > { %s787_s25 = sadd.s32 4294967295, %s724_s24   ;;  %s592_s26 = sadd.s32 4294967294, %s724_s24   ;;  %s724_s24 = sphi %s772_s24, %s932_s24   ;;  %s720_s23 = sphi %s770_s23, %s931_s23   ;;  %s716_s22 = sphi %s768_s22, %s930_s22   ;;  %s712_s21 = sphi %s766_s21, %s929_s21  }
   0x4   : > { %s791_s27 = sadd.s32 1, %s724_s24   ;;  %s116_s28 = sadd.s32 1, %s720_s23 }
   0x5   : > { %s113_s29 = ssub.s32 %s724_s24, %s791_s27  ;;  %p126_p0 = scmp.ne.s32.totalorder %s720_s23, %s716_s22 }
   0x6   : > { %p114_p1 = scmp.eq.s32.totalorder %s113_s29, 0  ;;  %p127_p2 = scmp.eq.s32.totalorder %s787_s25, 1 }
   0x7   : > { %p132_p3 = scmp.ne.s32.totalorder %s716_s22, %s712_s21  ;;  %p133_p4 = scmp.eq.s32.totalorder %s592_s26, 1 }
   0x8   : > { %s802_s30 = scalar_select %p114_p1, %s720_s23, %s116_s28  }
   0x9   : > { %p804_p5 = por %p127_p2, %p126_p0  ;;  %p808_p6 = por %p133_p4, %p132_p3 }
   0xa   : > { %p595_p7 = scmp.ge.s32.totalorder %s724_s24, 1  ;;  %p220_p8 = scmp.lt.s32.totalorder %s724_s24, 3 }
   0xc   : > { %p221_p9 = pnand %p595_p7, %p220_p8 }
   0xd   : > { %v277_v0 = vld [vmem:[%s921_s1] sm:$0xff] (!%p221_p9)  ;;  %v726_v1 = vmov (!%p221_p9), 0   ;;  %v727_v3 = vmov (!%p221_p9), 0.0   ;;  %p260_p10 = scmp.lt.s32.totalorder (!%p221_p9), %s787_s25, 1  ;;  %vm299_vm0 = vcmask (!%p221_p9), 64512   ;;  %v297_v15 = vld [vmem:[%s923_s3 + $0x10] sm:$0xff] (!%p221_p9) }
   0xe   : > { %224 = sbr.rel (%p221_p9) target bundleno = 535 (0x217), region = 36  ;;  %661 = vset.pattern.permute.xlu0 (!%p221_p9), %v726_v1  ;;  %v285_v2 = vld [vmem:[%s922_s2] sm:$0xff] (!%p221_p9)  ;;  %376 = vmatprep.mubr.f32.mxu0 (!%p221_p9), %v727_v3  ;;  %v296_v16 = vld [vmem:[%s923_s3 + $0x8] sm:$0xff] (!%p221_p9)  ;;  %v298_v17 = vld [vmem:[%s923_s3 + $0x18] sm:$0xff] (!%p221_p9)  ;;  %s243_s11 = sand.u32 (!%p221_p9), 1, %s716_s22  }
   0xf   : > { %280 = vperm.xlu0 (!%p221_p9), %661, %v277_v0   ;;  %388 = vmatprep.mubr.f32.mxu1 (!%p221_p9), %v727_v3  ;;  %v295_v14 = vld [vmem:[%s923_s3] sm:$0xff] (!%p221_p9)  ;;  %s596_s12 = sshll.u32 (!%p221_p9), %s243_s11, 6  ;;  %s615_s15 = sshll.u32 (!%p221_p9), %s787_s25, 10 }
  0x10   : > { %s858_s19 = scalar_lea.hbm (!%p221_p9), %s924_s4, %s615_s15  ;;  %s864_s20 = scalar_lea.sflag (!%p221_p9), [#allocation3], %s243_s11 }
  0x13   : > { %288 = vperm.xlu0 (!%p221_p9), %661, %v285_v2  }
  0x15   : > { %s822_s13 = scalar_select %p260_p10, %s787_s25, 1 }
  0x16   : > { %s728_s25 = smov [#allocation2]  }
  0x17   : > { %s612_s14 = sshll.u32 %s822_s13, 4  ;;  %s666_s28 = sshll.u32 %s728_s25, 4  ;;  %s667_s28 = int_to_ptr.vmem [resolvable:$false] %s666_s28 }
  0x18   : > { %s264_s17 = scalar_lea.vmem %s920_s0, %s612_s14  ;;  %s843_s14 = scalar_lea.vmem [#allocation2], %s596_s12 }
  0x19   : > { %v275_v5 = vld [vmem:[%s264_s17] sm:$0xff]  ;;  %v276_v6 = vld [vmem:[%s264_s17 + $0x8] sm:$0xff]  ;;  %s474_s16 = sshll.u32 %s843_s14, 4  ;;  %s668_s29 = scalar_lea.vmem %s667_s28, 2048  ;;  %s860_s16 = int_to_ptr.vmem [resolvable:$true] %s474_s16 }
  0x1a   : > { %s662_s26 = scalar_lea.vmem %s860_s16, 1024  ;;  %p669_p0 = scmp.lt.s32.totalorder %s860_s16, %s667_s28 }
  0x1b   : > { %p663_p11 = scmp.ne.s32.totalorder %s860_s16, %s662_s26  ;;  %p670_p1 = scmp.lt.s32.totalorder %s668_s29, %s662_s26 }
  0x1d   : > { %p664_p12 = pnand %p663_p11, %p804_p5  ;;  %p671_p2 = por %p670_p1, %p669_p0 }
  0x1f   : > { %p665_p13 = pneg %p664_p12 }
  0x21   : > { %p672_p3 = pnand %p671_p2, %p665_p13 }
  0x8e   : > { %v281_v4 = vpop.permute.xlu0 %280 }
  0x8f   : > { %v283_v7 = vmul.f32 %v281_v4, %v275_v5  ;;  %v284_v8 = vmul.f32 %v281_v4, %v276_v6 }
  0x92   : > { %v289_v9 = vpop.permute.xlu0 %288 }
  0x93   : > { %v291_v10 = vadd.f32 %v289_v9, %v283_v7  ;;  %v292_v11 = vadd.f32 %v289_v9, %v284_v8 }
  0x95   : > { %v294_v12 = vmax.f32 %v292_v11, 0.0  ;;  %v293_v13 = vmax.f32 %v291_v10, 0.0 }
  0x97   : > { %312 = vmatprep.subr.mxu0 %v294_v12  ;;  %616 = vmatprep.subr.mxu1 %v294_v12 }
  0x98   : > { %313 = vmatpush1.msra.mxu0 %v293_v13  ;;  %617 = vmatpush1.msra.mxu1 %v293_v13 }
  0x99   : > { %603 = vmatmul.mubr.msk.f32.vlgmr.msra.gmra.mrb[0].mxu0 %vm299_vm0, %v295_v14  ;;  %605 = vmatmul.mubr.msk.f32.vlgmr.msra.gmra.mrb[0].mxu1 %vm299_vm0, %v297_v15 }
  0x9a   : > { %382 = vmatprep.mubr.f32.mxu0 %v727_v3  ;;  %394 = vmatprep.mubr.f32.mxu1 %v727_v3 }
  0x9d   : > { %604 = vmatmul.mubr.msk.f32.gmra.mrb[2].mxu0 %vm299_vm0, %v296_v16  ;;  %606 = vmatmul.mubr.msk.f32.gmra.mrb[2].mxu1 %vm299_vm0, %v298_v17 }
 0x16c   : > { %v378_v18 = vpop.f32.mrb[0].mxu0  ;;  %v390_v19 = vpop.f32.mrb[0].mxu1 }
 0x16d   : > { %401 = vst [vmem:[%s843_s14] sm:$0xff] %v378_v18  ;;  %v380_v20 = vpop.f32.mrb[1].mxu0  ;;  %405 = vst [vmem:[%s843_s14 + $0x20] sm:$0xff] %v390_v19  ;;  %v392_v21 = vpop.f32.mrb[1].mxu1  ;;  %v426_v22 = vmul.f32 %v378_v18, %v378_v18  ;;  %v430_v23 = vmul.f32 %v390_v19, %v390_v19 }
 0x16e   : > { %402 = vst [vmem:[%s843_s14 + $0x8] sm:$0xff] %v380_v20  ;;  %v409_v24 = vadd.f32 %v380_v20, %v378_v18  ;;  %406 = vst [vmem:[%s843_s14 + $0x28] sm:$0xff] %v392_v21  ;;  %v427_v25 = vmul.f32 %v380_v20, %v380_v20  ;;  %v415_v26 = vadd.f32 %v392_v21, %v390_v19 }
 0x16f   : > { %v431_v27 = vmul.f32 %v392_v21, %v392_v21 }
 0x170   : > { %410 = vadd.xlane.f32.xlu1 %v409_v24  ;;  %v434_v28 = vadd.f32 %v427_v25, %v426_v22  ;;  %416 = vadd.xlane.f32.xlu0 %v415_v26  ;;  %v384_v29 = vpop.f32.mrb[2].mxu0  ;;  %v396_v31 = vpop.f32.mrb[2].mxu1 }
 0x171   : > { %v440_v30 = vadd.f32 %v431_v27, %v430_v23  ;;  %403 = vst [vmem:[%s843_s14 + $0x10] sm:$0xff] %v384_v29  ;;  %v386_v32 = vpop.f32.mrb[3].mxu0  ;;  %407 = vst [vmem:[%s843_s14 + $0x30] sm:$0xff] %v396_v31  ;;  %v398_v33 = vpop.f32.mrb[3].mxu1  ;;  %v428_v34 = vmul.f32 %v384_v29, %v384_v29  ;;  %v432_v35 = vmul.f32 %v396_v31, %v396_v31 }
 0x172   : > { %404 = vst [vmem:[%s843_s14 + $0x18] sm:$0xff] %v386_v32  ;;  %v429_v36 = vmul.f32 %v386_v32, %v386_v32  ;;  %408 = vst [vmem:[%s843_s14 + $0x38] sm:$0xff] %v398_v33  ;;  %v433_v37 = vmul.f32 %v398_v33, %v398_v33  ;;  %v412_v38 = vadd.f32 %v386_v32, %v384_v29 }
 0x173   : > { %v418_v39 = vadd.f32 %v398_v33, %v396_v31 }
 0x174   : > { %435 = vadd.xlane.f32.xlu1 %v434_v28  ;;  %v437_v40 = vadd.f32 %v429_v36, %v428_v34  ;;  %v443_v41 = vadd.f32 %v433_v37, %v432_v35 }
 0x178   : > { %441 = vadd.xlane.f32.xlu1 %v440_v30 }
 0x17c   : > { %413 = vadd.xlane.f32.xlu1 %v412_v38 }
 0x180   : > { %419 = vadd.xlane.f32.xlu1 %v418_v39 }
 0x184   : > { %438 = vadd.xlane.f32.xlu1 %v437_v40 }
 0x188   : > { %444 = vadd.xlane.f32.xlu1 %v443_v41 }
 0x189   : > { %675 = shalt.err (!%p672_p3)
}
 0x18a   : > { %s676_s9 = scalar_lea.hbm %s858_s19, 1024  ;;  %s680_s12 = scalar_lea.hbm %s924_s4, 2048 }
 0x18b   : > { %p677_p4 = scmp.ne.s32.totalorder %s858_s19, %s676_s9  ;;  %p681_p9 = scmp.lt.u32.totalorder %s858_s19, %s924_s4 }
 0x18c   : > { %p682_p10 = scmp.lt.u32.totalorder %s680_s12, %s676_s9  ;;  %p684_p12 = scmp.lt.u32.totalorder %s676_s9, %s858_s19 }
 0x18d   : > { %p678_p7 = pnand %p677_p4, %p804_p5 }
 0x18e   : > { %p683_p11 = por %p682_p10, %p681_p9 }
 0x18f   : > { %p679_p8 = pneg %p678_p7 }
 0x190   : > { %p685_p13 = por %p684_p12, %p683_p11 }
 0x192   : > { %p686_p0 = pnand %p685_p13, %p679_p8 }
 0x194   : > { %689 = shalt.err (!%p686_p0)
}
 0x195   : > { %s729_s17 = smov 256   ;;  %s730_s18 = smov 16   ;;  %vm421_vm1 = vcmask 7168  }
 0x196   : > { %618 = dma.vmem_to_hbm [thread:$0]  (%p804_p5), %s860_s16, 1024, %s858_s19, %s864_s20, %s729_s17, %s729_s17, %s730_s18  }
 0x197   : > { %s613_s26 = sshll.u32 %s822_s13, 5 }
 0x198   : > { %s269_s29 = scalar_lea.vmem %s925_s5, %s613_s26  ;;  %s274_s11 = scalar_lea.vmem %s926_s6, %s613_s26 }
 0x1fd   : > { %v411_v42 = vpop.xlane.xlu1 %410  ;;  %v417_v43 = vpop.xlane.xlu0 %416 }
 0x1fe   : > { %422 = vst.msk [vmem:[%s269_s29] sm:$0xff] %vm421_vm1, %v411_v42  ;;  %424 = vst.msk [vmem:[%s269_s29 + $0x10] sm:$0xff] %vm421_vm1, %v417_v43 }
 0x201   : > { %v436_v44 = vpop.xlane.xlu1 %435 }
 0x202   : > { %446 = vst.msk [vmem:[%s274_s11] sm:$0xff] %vm421_vm1, %v436_v44 }
 0x205   : > { %v442_v45 = vpop.xlane.xlu1 %441 }
 0x206   : > { %448 = vst.msk [vmem:[%s274_s11 + $0x10] sm:$0xff] %vm421_vm1, %v442_v45 }
 0x209   : > { %v414_v46 = vpop.xlane.xlu1 %413 }
 0x20a   : > { %423 = vst.msk [vmem:[%s269_s29 + $0x8] sm:$0xff] %vm421_vm1, %v414_v46 }
 0x20d   : > { %v420_v47 = vpop.xlane.xlu1 %419 }
 0x20e   : > { %425 = vst.msk [vmem:[%s269_s29 + $0x18] sm:$0xff] %vm421_vm1, %v420_v47 }
 0x211   : > { %v439_v48 = vpop.xlane.xlu1 %438 }
 0x212   : > { %447 = vst.msk [vmem:[%s274_s11 + $0x8] sm:$0xff] %vm421_vm1, %v439_v48 }
 0x215   : > { %v445_v49 = vpop.xlane.xlu1 %444 }
 0x216   : > { %449 = vst.msk [vmem:[%s274_s11 + $0x18] sm:$0xff] %vm421_vm1, %v445_v49 }
 0x217 PF: > { %p624_p5 = scmp.ge.s32.totalorder %s724_s24, 2  ;;  %s495_s7 = sand.u32 1, %s712_s21  }
 0x218   : > { %s496_s13 = scalar_lea.sflag [#allocation3], %s495_s7 }
 0x219   : > { %p621_p1 = pnand %p624_p5, %p808_p6 }
 0x21b   : > { %707 = dma.done.wait (!%p621_p1), %s496_s13, 1024  }
 0x21c   : > { %709 = vsyncadd (!%p621_p1), %s496_s13, 4294966272  ;;  %p17_p2 = scmp.ge.s32.totalorder %s791_s27, 4   ;;  %s929_s21 = smov %s716_s22 }
 0x21d   : > { %s930_s22 = smov %s720_s23  ;;  %s931_s23 = smov %s802_s30 }
 0x21e   : > { %s932_s24 = smov %s791_s27  ;;  %19 = sbr.rel (!%p17_p2) target bundleno = 3 (0x3), region = 95 }
 0x225   :  { %517 = vsyncpa [#allocation3], 1 }
 0x226   :  { %519 = vsyncpa [#allocation3 + $0x1], 1 }

</bundles_post_ra>
